<compile_context>
chip_gen: v7x
topology: tpu7x:2x2x1
jax: 0.10.0
libtpu: 0.0.40
codegen_flags: <defaults>
</compile_context>

<pallas_src>
import functools

import jax
import jax.numpy as jnp
from jax.experimental import pallas as pl
from jax.experimental.pallas import tpu as pltpu

GAMMA = 2.0          # statically 2 -> implemented as an explicit square
IGNORE_INDEX = 255
_STRIP = 512         # lanes per in-kernel compute strip (bounds vreg pressure)


def _stream_budget_bytes():
    """VMEM budget for the double-buffered logits+target input streams."""
    try:
        cap = pltpu.get_tpu_info().vmem_capacity_bytes   # 64 MiB v7x, 128 MiB v5e/v6e
    except Exception:
        cap = 64 * 1024 * 1024                           # conservative (v7x per-core)
    return min(cap // 4, 16 * 1024 * 1024)


def _choose_tiles(hw, c, logit_bytes, tgt_bytes):
    """Return (block, strip): block = lanes DMA'd per grid step,
    strip = lanes per in-kernel compute iteration."""
    if hw <= 2 * _STRIP:
        return hw, hw                                    # single full-extent block/strip
    per_lane = 2 * (c * logit_bytes + tgt_bytes)         # x2: double-buffered inputs
    budget = _stream_budget_bytes()
    max_lanes = max(_STRIP, (budget // per_lane) // _STRIP * _STRIP)
    hw_floor = (hw // _STRIP) * _STRIP                   # >= 1024 here, multiple of 128
    return min(max_lanes, hw_floor), _STRIP


def _focal_loss_kernel(logits_ref, tgt_ref, out_ref, acc_ref, *, hw, block, strip):
    t_i = pl.program_id(1)
    n_strips = block // strip                            # static

    # zero the lane-dense per-image accumulator at the start of every image
    @pl.when(t_i == 0)
    def _():
        acc_ref[...] = jnp.zeros_like(acc_ref)

    base = t_i * block                                   # element offset of this block

    def strip_body(start, logits, tgt):
        # logits: (C, strip) f32 (classes on sublanes), tgt: (1, strip) i32 lane-dense
        pos = base + start + jax.lax.broadcasted_iota(jnp.int32, (1, strip), 1)
        valid = (tgt != IGNORE_INDEX) & (pos < hw)       # ignore_index + ragged tail
        safe_tgt = jnp.where(valid, tgt, 0)

        # numerically stable softmax pieces over the short class/sublane axis
        m = jnp.max(logits, axis=0, keepdims=True)       # (1, strip)
        e = jnp.exp(logits - m)                          # (C, strip)   C exps / position
        denom = jnp.sum(e, axis=0, keepdims=True)        # (1, strip)

        # one-hot gather of target-class logit and exp (shared mask, no dynamic gather)
        cls = jax.lax.broadcasted_iota(jnp.int32, logits.shape, 0)
        onehot = cls == safe_tgt
        logit_t = jnp.sum(jnp.where(onehot, logits, 0.0), axis=0, keepdims=True)
        e_t = jnp.sum(jnp.where(onehot, e, 0.0), axis=0, keepdims=True)

        # CE term; pt = softmax prob of the target class, reusing `e` (no exp(-logpt)).
        # approx=False keeps f32-exact parity with the reference; flip to approx=True
        # only if ~1e-3 relative error in pt is acceptable.
        logpt = jnp.maximum(m + jnp.log(denom) - logit_t, 0.0)
        pt = e_t * pl.reciprocal(denom)
        omp = 1.0 - pt
        # final mask: ignored / out-of-range lanes contribute exactly 0 (this also
        # quashes any garbage read past hw in the ragged last block).
        loss = jnp.where(valid, omp * omp * logpt, 0.0)
        acc_ref[...] += loss                             # lane-dense VPU add

    if n_strips == 1:
        # block == strip: load the whole block directly (also covers ragged hw blocks)
        strip_body(0,
                   logits_ref[...].astype(jnp.float32),
                   tgt_ref[...].astype(jnp.int32))
    else:
        # only run strips that contain at least one in-range lane
        rem = hw - base
        n_act = jnp.minimum((rem + strip - 1) // strip, n_strips)

        @pl.loop(0, n_act)
        def _(s):
            start = pl.multiple_of(s * strip, 128)
            strip_body(start,
                       logits_ref[:, pl.ds(start, strip)].astype(jnp.float32),
                       tgt_ref[:, pl.ds(start, strip)].astype(jnp.int32))

    # one cross-lane reduction + scalar store per image, on its last block only
    @pl.when(t_i == pl.num_programs(1) - 1)
    def _():
        out_ref[...] = jnp.sum(acc_ref[...], keepdims=True)


@functools.partial(jax.jit, static_argnames=("size_average",))
def focal_loss(output, target, size_average=True):
    """output: (N, C, H, W) float logits (f32 or bf16);
    target: (N, H, W) integer class ids (< C) plus ignore_index=255 (uint8 recommended)."""
    n, c, h, w = output.shape
    hw = h * w

    # Free, contiguous views — no transpose, no pad, no wrapper dtype round trips.
    logits = output.reshape(n, c, hw)
    tgt = target.reshape(n, 1, hw)
    if (not jnp.issubdtype(tgt.dtype, jnp.integer)
            or jnp.dtype(tgt.dtype).itemsize > 4):
        tgt = tgt.astype(jnp.int32)          # e.g. int64 / float targets

    block, strip = _choose_tiles(hw, c,
                                 jnp.dtype(output.dtype).itemsize,
                                 jnp.dtype(tgt.dtype).itemsize)
    num_blocks = pl.cdiv(hw, block)

    kernel = functools.partial(_focal_loss_kernel, hw=hw, block=block, strip=strip)

    per_image = pl.pallas_call(
        kernel,
        out_shape=jax.ShapeDtypeStruct((n, 1, 1), jnp.float32),
        grid_spec=pltpu.PrefetchScalarGridSpec(
            num_scalar_prefetch=0,
            grid=(n, num_blocks),
            in_specs=[
                pl.BlockSpec((None, c, block), lambda i, t: (i, 0, t)),
                pl.BlockSpec((None, 1, block), lambda i, t: (i, 0, t)),
            ],
            out_specs=pl.BlockSpec((None, 1, 1), lambda i, t: (i, 0, 0)),
            scratch_shapes=[pltpu.VMEM((1, strip), jnp.float32)],
        ),
        compiler_params=pltpu.CompilerParams(
            # batch axis parallel -> v7x's 2nd TensorCore takes half the images;
            # spatial-block axis is a per-image reduction, hence "arbitrary".
            dimension_semantics=("parallel", "arbitrary"),
            vmem_limit_bytes=32 * 1024 * 1024,
        ),
        # TODO(synk): when N < number of TensorCores (e.g. N==1 on v7x), add a leading
        # parallel axis that splits the spatial blocks across cores with per-core
        # partial outputs instead of relying on the batch axis alone.
    )(logits, tgt)

    loss_sum = jnp.sum(per_image)
    if size_average:
        # torch .mean() divides by the total element count (ignored pixels contribute
        # zero but still count in the denominator).
        return loss_sum / (n * hw)
    return loss_sum


def _focal_loss_ref(output, target, size_average=True):
    # pure-JAX reference for verification
    n, c, h, w = output.shape
    logits = jnp.transpose(output, (0, 2, 3, 1)).reshape(-1, c).astype(jnp.float32)
    tgt = target.reshape(-1).astype(jnp.int32)
    valid = tgt != IGNORE_INDEX
    safe = jnp.where(valid, tgt, 0)
    logp = jax.nn.log_softmax(logits, axis=-1)
    logpt = -jnp.take_along_axis(logp, safe[:, None], axis=-1)[:, 0]
    logpt = jnp.where(valid, logpt, 0.0)
    pt = jnp.exp(-logpt)
    loss = (1.0 - pt) ** GAMMA * logpt
    return loss.mean() if size_average else loss.sum()


if __name__ == "__main__":
    key = jax.random.PRNGKey(0)
    k1, k2, k3 = jax.random.split(key, 3)

    # main case: N=2, C=4, H=W=16, f32 logits, uint8 targets (narrow HBM stream)
    N, C, H, W = 2, 4, 16, 16
    output = jax.random.normal(k1, (N, C, H, W), dtype=jnp.float32)
    target = jax.random.randint(k2, (N, H, W), 0, C, dtype=jnp.int32)
    ignore_mask = jax.random.bernoulli(k3, 0.1, (N, H, W))
    target = jnp.where(ignore_mask, IGNORE_INDEX, target).astype(jnp.uint8)

    result = focal_loss(output, target, size_average=True)
    jax.block_until_ready(result)
    ref = _focal_loss_ref(output, target, size_average=True)
    assert jnp.allclose(result, ref, atol=1e-5, rtol=1e-5), (result, ref)

    result_sum = focal_loss(output, target, size_average=False)
    jax.block_until_ready(result_sum)
    ref_sum = _focal_loss_ref(output, target, size_average=False)
    assert jnp.allclose(result_sum, ref_sum, atol=1e-4, rtol=1e-5), (result_sum, ref_sum)

    # bf16 logits: halves the dominant HBM stream; kernel still computes in f32
    out_bf16 = output.astype(jnp.bfloat16)
    res_bf16 = focal_loss(out_bf16, target, size_average=True)
    jax.block_until_ready(res_bf16)
    ref_bf16 = _focal_loss_ref(out_bf16, target, size_average=True)
    assert jnp.allclose(res_bf16, ref_bf16, atol=1e-5, rtol=1e-5), (res_bf16, ref_bf16)

    # ragged spatial extent + int32 targets (compatibility path, in-kernel tail mask)
    k4, k5, k6 = jax.random.split(jax.random.PRNGKey(1), 3)
    N2, C2, H2, W2 = 2, 3, 10, 13
    out2 = jax.random.normal(k4, (N2, C2, H2, W2), dtype=jnp.float32)
    tgt2 = jax.random.randint(k5, (N2, H2, W2), 0, C2, dtype=jnp.int32)
    tgt2 = jnp.where(jax.random.bernoulli(k6, 0.1, (N2, H2, W2)), IGNORE_INDEX, tgt2)
    res2 = focal_loss(out2, tgt2, size_average=True)
    jax.block_until_ready(res2)
    ref2 = _focal_loss_ref(out2, tgt2, size_average=True)
    assert jnp.allclose(res2, ref2, atol=1e-5, rtol=1e-5), (res2, ref2)

    # larger spatial extent: exercises the multi-block / multi-strip path
    # (hw=2304 -> 2048-lane blocks, 4 strips of 512, ragged 256-lane second block)
    k7, k8, k9 = jax.random.split(jax.random.PRNGKey(2), 3)
    N3, C3, H3, W3 = 2, 4, 48, 48
    out3 = jax.random.normal(k7, (N3, C3, H3, W3), dtype=jnp.float32)
    tgt3 = jax.random.randint(k8, (N3, H3, W3), 0, C3, dtype=jnp.int32)
    tgt3 = jnp.where(jax.random.bernoulli(k9, 0.1, (N3, H3, W3)),
                     IGNORE_INDEX, tgt3).astype(jnp.uint8)
    res3 = focal_loss(out3, tgt3, size_average=True)
    jax.block_until_ready(res3)
    ref3 = _focal_loss_ref(out3, tgt3, size_average=True)
    assert jnp.allclose(res3, ref3, atol=1e-5, rtol=1e-5), (res3, ref3)

    print("KERNEL_OK")
</pallas_src>

<mosaic_0001>
module attributes {stable_mosaic.version = 11 : i64} {
  func.func @_focal_loss_kernel(%arg0: i32, %arg1: i32, %arg2: memref<1x4x256xf32, #tpu.memory_space<vmem>>, %arg3: memref<1x1x256xi8, #tpu.memory_space<vmem>>, %arg4: memref<1x1x1xf32, #tpu.memory_space<vmem>>, %arg5: memref<1x256xf32, #tpu.memory_space<vmem>>) attributes {dimension_semantics = [#tpu.dimension_semantics<parallel>, #tpu.dimension_semantics<arbitrary>], iteration_bounds = array<i64: 2, 1>, scalar_prefetch = 0 : i64, scratch_operands = 1 : i64, tpu.core_type = #tpu.core_type<tc>, window_params = [{transform_indices = @transform_0, window_bounds = array<i64: 1, 4, 256>}, {transform_indices = @transform_1, window_bounds = array<i64: 1, 1, 256>}, {transform_indices = @transform_2, window_bounds = array<i64: 1, 1, 1>}]} {
    %c0_i32 = arith.constant 0 : i32
    %0 = arith.cmpi eq, %arg1, %c0_i32 : i32
    %1 = arith.extui %0 : i1 to i32
    %c0_i32_0 = arith.constant 0 : i32
    %2 = arith.cmpi ne, %1, %c0_i32_0 : i32
    scf.if %2 {
      %cst_23 = arith.constant 0.000000e+00 : f32
      %57 = vector.broadcast %cst_23 : f32 to vector<1x256xf32>
      %c0_24 = arith.constant 0 : index
      %c0_25 = arith.constant 0 : index
      %58 = vector.load %arg5[%c0_24, %c0_25] : memref<1x256xf32, #tpu.memory_space<vmem>>, vector<1x256xf32>
      tpu.vector_store %arg5[%c0_24, %c0_25], %57 {strides = array<i32>} : memref<1x256xf32, #tpu.memory_space<vmem>>, vector<1x256xf32>,
    } else {
    }
    %c256_i32 = arith.constant 256 : i32
    %3 = arith.muli %arg1, %c256_i32 : i32
    %c0 = arith.constant 0 : index
    %c0_1 = arith.constant 0 : index
    %c0_2 = arith.constant 0 : index
    %4 = vector.load %arg2[%c0, %c0_1, %c0_2] : memref<1x4x256xf32, #tpu.memory_space<vmem>>, vector<1x4x256xf32>
    %5 = vector.shape_cast %4 : vector<1x4x256xf32> to vector<4x256xf32>
    %c0_3 = arith.constant 0 : index
    %c0_4 = arith.constant 0 : index
    %c0_5 = arith.constant 0 : index
    %6 = vector.load %arg3[%c0_3, %c0_4, %c0_5] : memref<1x1x256xi8, #tpu.memory_space<vmem>>, vector<1x1x256xi8>
    %7 = vector.shape_cast %6 : vector<1x1x256xi8> to vector<1x256xi8>
    %8 = arith.extui %7 : vector<1x256xi8> to vector<1x256xi32>
    %c0_i32_6 = arith.constant 0 : i32
    %9 = arith.addi %3, %c0_i32_6 : i32
    %10 = tpu.iota {dimensions = array<i32: 1>} : vector<1x256xi32>
    %11 = vector.broadcast %9 : i32 to vector<1x256xi32>
    %12 = arith.addi %11, %10 : vector<1x256xi32>
    %c255_i32 = arith.constant 255 : i32
    %13 = vector.broadcast %c255_i32 : i32 to vector<1x256xi32>
    %14 = arith.cmpi ne, %8, %13 : vector<1x256xi32>
    %c256_i32_7 = arith.constant 256 : i32
    %15 = vector.broadcast %c256_i32_7 : i32 to vector<1x256xi32>
    %16 = arith.cmpi slt, %12, %15 : vector<1x256xi32>
    %17 = arith.andi %14, %16 : vector<1x256xi1>
    %c0_i32_8 = arith.constant 0 : i32
    %18 = vector.broadcast %c0_i32_8 : i32 to vector<1x256xi32>
    %19 = arith.select %17, %8, %18 : vector<1x256xi1>, vector<1x256xi32>
    %cst = arith.constant dense<0xFF800000> : vector<256xf32>
    %20 = vector.multi_reduction <maximumf>, %5, %cst [0] : vector<4x256xf32> to vector<256xf32>
    %21 = vector.shape_cast %20 : vector<256xf32> to vector<1x256xf32>
    %22 = vector.broadcast %21 : vector<1x256xf32> to vector<4x256xf32>
    %23 = arith.subf %5, %22 : vector<4x256xf32>
    %24 = math.exp %23 : vector<4x256xf32>
    %cst_9 = arith.constant dense<0.000000e+00> : vector<256xf32>
    %25 = vector.multi_reduction <add>, %24, %cst_9 [0] : vector<4x256xf32> to vector<256xf32>
    %26 = vector.shape_cast %25 : vector<256xf32> to vector<1x256xf32>
    %27 = tpu.iota {dimensions = array<i32: 0>} : vector<4x256xi32>
    %28 = vector.broadcast %19 : vector<1x256xi32> to vector<4x256xi32>
    %29 = arith.cmpi eq, %27, %28 : vector<4x256xi32>
    %cst_10 = arith.constant 0.000000e+00 : f32
    %30 = vector.broadcast %cst_10 : f32 to vector<4x256xf32>
    %31 = arith.select %29, %5, %30 : vector<4x256xi1>, vector<4x256xf32>
    %cst_11 = arith.constant dense<0.000000e+00> : vector<256xf32>
    %32 = vector.multi_reduction <add>, %31, %cst_11 [0] : vector<4x256xf32> to vector<256xf32>
    %33 = vector.shape_cast %32 : vector<256xf32> to vector<1x256xf32>
    %cst_12 = arith.constant 0.000000e+00 : f32
    %34 = vector.broadcast %cst_12 : f32 to vector<4x256xf32>
    %35 = arith.select %29, %24, %34 : vector<4x256xi1>, vector<4x256xf32>
    %cst_13 = arith.constant dense<0.000000e+00> : vector<256xf32>
    %36 = vector.multi_reduction <add>, %35, %cst_13 [0] : vector<4x256xf32> to vector<256xf32>
    %37 = vector.shape_cast %36 : vector<256xf32> to vector<1x256xf32>
    %38 = math.log %26 : vector<1x256xf32>
    %39 = arith.addf %21, %38 : vector<1x256xf32>
    %40 = arith.subf %39, %33 : vector<1x256xf32>
    %cst_14 = arith.constant 0.000000e+00 : f32
    %41 = vector.broadcast %cst_14 : f32 to vector<1x256xf32>
    %42 = arith.maximumf %40, %41 : vector<1x256xf32>
    %43 = tpu.reciprocal %26 : vector<1x256xf32> -> vector<1x256xf32>
    %44 = arith.mulf %37, %43 : vector<1x256xf32>
    %cst_15 = arith.constant 1.000000e+00 : f32
    %45 = vector.broadcast %cst_15 : f32 to vector<1x256xf32>
    %46 = arith.subf %45, %44 : vector<1x256xf32>
    %47 = arith.mulf %46, %46 : vector<1x256xf32>
    %48 = arith.mulf %47, %42 : vector<1x256xf32>
    %cst_16 = arith.constant 0.000000e+00 : f32
    %49 = vector.broadcast %cst_16 : f32 to vector<1x256xf32>
    %50 = arith.select %17, %48, %49 : vector<1x256xi1>, vector<1x256xf32>
    %c0_17 = arith.constant 0 : index
    %c0_18 = arith.constant 0 : index
    %51 = vector.load %arg5[%c0_17, %c0_18] : memref<1x256xf32, #tpu.memory_space<vmem>>, vector<1x256xf32>
    %52 = arith.addf %51, %50 : vector<1x256xf32>
    %c0_19 = arith.constant 0 : index
    %c0_20 = arith.constant 0 : index
    %53 = vector.load %arg5[%c0_19, %c0_20] : memref<1x256xf32, #tpu.memory_space<vmem>>, vector<1x256xf32>
    tpu.vector_store %arg5[%c0_19, %c0_20], %52 {strides = array<i32>} : memref<1x256xf32, #tpu.memory_space<vmem>>, vector<1x256xf32>,
    %c0_i32_21 = arith.constant 0 : i32
    %54 = arith.cmpi eq, %arg1, %c0_i32_21 : i32
    %55 = arith.extui %54 : i1 to i32
    %c0_i32_22 = arith.constant 0 : i32
    %56 = arith.cmpi ne, %55, %c0_i32_22 : i32
    scf.if %56 {
      %c0_23 = arith.constant 0 : index
      %c0_24 = arith.constant 0 : index
      %57 = vector.load %arg5[%c0_23, %c0_24] : memref<1x256xf32, #tpu.memory_space<vmem>>, vector<1x256xf32>
      %58 = vector.shape_cast %57 : vector<1x256xf32> to vector<1x1x256xf32>
      %cst_25 = arith.constant dense<0.000000e+00> : vector<1xf32>
      %59 = vector.multi_reduction <add>, %58, %cst_25 [1, 2] : vector<1x1x256xf32> to vector<1xf32>
      %60 = vector.shape_cast %59 : vector<1xf32> to vector<1x1x1xf32>
      %61 = vector.extract %60[0, 0, 0] : f32 from vector<1x1x1xf32>
      %62 = vector.broadcast %61 : f32 to vector<1x1xf32>
      %c0_26 = arith.constant 0 : index
      %c0_27 = arith.constant 0 : index
      %c0_28 = arith.constant 0 : index
      %63 = vector.load %arg4[%c0_26, %c0_27, %c0_28] : memref<1x1x1xf32, #tpu.memory_space<vmem>>, vector<1x1x1xf32>
      %64 = vector.shape_cast %63 : vector<1x1x1xf32> to vector<1x1xf32>
      %65 = vector.shape_cast %62 : vector<1x1xf32> to vector<1x1x1xf32>
      tpu.vector_store %arg4[%c0_26, %c0_27, %c0_28], %65 {strides = array<i32>} : memref<1x1x1xf32, #tpu.memory_space<vmem>>, vector<1x1x1xf32>,
    } else {
    }
    return
  }
  func.func @transform_0(%arg0: i32, %arg1: i32) -> (i32, i32, i32) {
    %c0_i32 = arith.constant 0 : i32
    %c0_i32_0 = arith.constant 0 : i32
    return %arg0, %c0_i32, %arg1 : i32, i32, i32
  }
  func.func @transform_1(%arg0: i32, %arg1: i32) -> (i32, i32, i32) {
    %c0_i32 = arith.constant 0 : i32
    %c0_i32_0 = arith.constant 0 : i32
    return %arg0, %c0_i32, %arg1 : i32, i32, i32
  }
  func.func @transform_2(%arg0: i32, %arg1: i32) -> (i32, i32, i32) {
    %c0_i32 = arith.constant 0 : i32
    %c0_i32_0 = arith.constant 0 : i32
    %c0_i32_1 = arith.constant 0 : i32
    return %arg0, %c0_i32, %c0_i32_0 : i32, i32, i32
  }
}

</mosaic_0001>

<bundles_post_ra>
// kernel: focal_loss.1
= control target key start
LH: loop header
LB: loop body
LE: loop exit
PB: predicated region body
PF: predicated region fallthrough
CT: control target
= control target key end

     0   :  { %s572_s9 = smov 0   ;;  %s574_s10 = smov 0   ;;  %s659_s0 = inlined_call_operand.vmem [shape: f32[2,4,256], index: 0, kind: input, shape index: {}]   ;;  %s660_s1 = inlined_call_operand.vmem [shape: u8[2,1,256], index: 1, kind: input, shape index: {}]   ;;  %s661_s2 = inlined_call_operand.vmem [shape: f32[2,1,1], index: 2, kind: output, shape index: {}]  }
   0x1   :  { %s576_s11 = smov 0  }
   0x2 LB: > { %s24_s12 = sadd.s32 1, %s548_s10  ;;  %p483_p0 = scmp.ge.s32.totalorder %s552_s11, 1  ;;  %s552_s11 = sphi %s576_s11, %s12_s11   ;;  %s548_s10 = sphi %s574_s10, %s667_s10   ;;  %s544_s9 = sphi %s572_s9, %s666_s9  }
   0x3   : > { %p26_p1 = scmp.ge.s32.totalorder %s24_s12, 2  ;;  %p147_p2 = scmp.lt.s32.totalorder %s552_s11, 3 }
   0x5   : > { %s669_s12 = smov (%p26_p1, %s24_s12), 0  ;;  %p148_p3 = pnand %p483_p0, %p147_p2 }
   0x6   : > { %p180_p4 = scmp.lt.s32.totalorder (!%p148_p3), %s544_s9, 1  ;;  %v205_v0 = vlaneseq (!%p148_p3)  ;;  %v554_v2 = vmov (!%p148_p3), 0.0   ;;  %vm233_vm1 = vcmask (!%p148_p3), 1043456   ;;  %v555_v17 = vmov (!%p148_p3), 1  }
   0x7   : > { %151 = sbr.rel (%p148_p3) target bundleno = 314 (0x13a), region = 28  ;;  %v226_v18 = vcombine.low (!%p148_p3), %v555_v17, %v555_v17  ;;  %vm387_vm7 = vcmask (!%p148_p3), 1040384   ;;  %vm401_vm8 = vcmask (!%p148_p3), 0  }
   0x8   : > { %vm592_vm0 = vcmp.lt.s32.totalorder (!%p148_p3), %v205_v0, 256  ;;  %v612_v24 = vshrl.u32 (!%p148_p3), %v205_v0, 7 }
   0x9   : > { %209 = vst.msk [vmem:[#allocation2] sm:$0x3] (!%p148_p3), %vm592_vm0, %v554_v2  ;;  %vm227_vm3 = vcmp.ne.s32.totalorder (!%p148_p3), %v226_v18, 0 }
   0xa   : > { %v621_v28 = vsub.s32 (!%p148_p3), 0, %v612_v24  ;;  %v280_v31 = vsub.s32 (!%p148_p3), 4, %v612_v24 }
   0xe   : > { %s671_s9 = smov (!%p180_p4, %s544_s9), 1 }
   0xf   : > { %s489_s13 = sshll.u32 %s671_s9, 3  ;;  %s486_s14 = sshll.u32 %s671_s9, 1 }
  0x10   : > { %s187_s17 = scalar_lea.vmem %s659_s0, %s489_s13  ;;  %s196_s20 = scalar_lea.vmem %s660_s1, %s486_s14 }
  0x11   : > { %v211_v3 = vld [vmem:[%s187_s17] sm:$0xff]  ;;  %s200_s23 = scalar_lea.vmem %s661_s2, %s671_s9 }
  0x12   : > { %v231_v4 = vcombine.high %v211_v3, %v211_v3  ;;  %v234_v5 = vsel %vm233_vm1, %v211_v3, -inf  ;;  %v212_v6 = vld [vmem:[%s196_s20] sm:$0x3] }
  0x13   : > { %v235_v7 = vrot.slane %v234_v5, 4  ;;  %v213_v11 = vunpack.c.0.s8 %v212_v6 }
  0x14   : > { %v241_v8 = vsel %vm233_vm1, %v231_v4, -inf }
  0x15   : > { %v236_v9 = vmax.f32 %v234_v5, %v235_v7  ;;  %v242_v10 = vrot.slane %v241_v8, 4  ;;  %v214_v16 = vand.u32 255, %v213_v11 }
  0x17   : > { %v237_v12 = vrot.slane %v236_v9, 2  ;;  %v243_v13 = vmax.f32 %v241_v8, %v242_v10  ;;  %vm221_vm2 = vcmp.ne.s32.totalorder %v214_v16, 255 }
  0x18   : > { %vm614_vm4 = vmand %vm221_vm2, %vm227_vm3 }
  0x19   : > { %v238_v14 = vmax.f32 %v236_v9, %v237_v12  ;;  %v244_v15 = vrot.slane %v243_v13, 2  ;;  %v229_v29 = vsel %vm614_vm4, %v214_v16, 0 }
  0x1a   : > { %v277_v32 = vrot.slane %v229_v29, %v621_v28  ;;  %v281_v33 = vrot.slane %v229_v29, %v280_v31 }
  0x1b   : > { %v239_v19 = vrot.slane %v238_v14, 1  ;;  %v245_v20 = vmax.f32 %v243_v13, %v244_v15 }
  0x1c   : > { %v285_v34 = vrot.slane %v277_v32, %v621_v28  ;;  %v289_v35 = vrot.slane %v281_v33, %v621_v28 }
  0x1d   : > { %v608_v21 = vmax.f32 %v238_v14, %v239_v19  ;;  %v246_v22 = vrot.slane %v245_v20, 1 }
  0x1e   : > { %vm290_vm5 = vcmp.eq.s32.totalorder %v612_v24, %v285_v34  ;;  %vm291_vm6 = vcmp.eq.s32.totalorder %v612_v24, %v289_v35 }
  0x1f   : > { %v610_v23 = vmax.f32 %v245_v20, %v246_v22  ;;  %v292_v36 = vsel %vm290_vm5, %v211_v3, 0.0  ;;  %v293_v40 = vsel %vm291_vm6, %v231_v4, 0.0 }
  0x20   : > { %v294_v43 = vsel %vm233_vm1, %v292_v36, 0.0  ;;  %v301_v50 = vsel %vm233_vm1, %v293_v40, 0.0  ;;  %v556_v36 = vmov 1966171168  }
  0x21   : > { %v250_v26 = vcombine.low %v608_v21, %v610_v23  ;;  %v295_v52 = vrot.slane %v294_v43, 4  ;;  %v302_v57 = vrot.slane %v301_v50, 4 }
  0x23   : > { %v252_v27 = vsub.f32 %v211_v3, %v250_v26  ;;  %v296_v61 = vadd.f32 %v295_v52, %v294_v43  ;;  %v303_v2 = vadd.f32 %v302_v57, %v301_v50  ;;  %v349_v52 = vld [vmem:[#allocation2] sm:$0x3] }
  0x25   : > { %v253_v30 = vmul.f32 1.442695, %v252_v27  ;;  %v297_v6 = vrot.slane %v296_v61, 2  ;;  %v304_v9 = vrot.slane %v303_v2, 2 }
  0x27   : > { %520 = vpow2.f32 %v253_v30  ;;  %v298_v11 = vadd.f32 %v297_v6, %v296_v61  ;;  %v305_v13 = vadd.f32 %v304_v9, %v303_v2 }
  0x29   : > { %v299_v15 = vrot.slane %v298_v11, 1  ;;  %v306_v17 = vrot.slane %v305_v13, 1 }
  0x2b   : > { %v300_v22 = vadd.f32 %v299_v15, %v298_v11  ;;  %v307_v31 = vadd.f32 %v306_v17, %v305_v13 }
  0x31   : > { %v521_v37 = vpop.eup %520 }
  0x32   : > { %v256_v38 = vcombine.high %v521_v37, %v521_v37  ;;  %v258_v39 = vsel %vm233_vm1, %v521_v37, 0.0  ;;  %v308_v41 = vsel %vm290_vm5, %v521_v37, 0.0  ;;  %v352_v37 = vunpack.c.l.s4 %v556_v36 }
  0x33   : > { %v259_v42 = vrot.slane %v258_v39, 4  ;;  %v310_v44 = vsel %vm233_vm1, %v308_v41, 0.0 }
  0x34   : > { %v265_v45 = vsel %vm233_vm1, %v256_v38, 0.0  ;;  %v309_v46 = vsel %vm291_vm6, %v256_v38, 0.0  ;;  %v311_v47 = vrot.slane %v310_v44, 4 }
  0x35   : > { %v260_v48 = vadd.f32 %v259_v42, %v258_v39  ;;  %v266_v49 = vrot.slane %v265_v45, 4  ;;  %v317_v51 = vsel %vm233_vm1, %v309_v46, 0.0 }
  0x36   : > { %v318_v53 = vrot.slane %v317_v51, 4  ;;  %v312_v56 = vadd.f32 %v311_v47, %v310_v44 }
  0x37   : > { %v261_v54 = vrot.slane %v260_v48, 2  ;;  %v267_v55 = vadd.f32 %v266_v49, %v265_v45  ;;  %v353_v45 = vunpack.c.0.s8 %v352_v37 }
  0x38   : > { %v319_v60 = vadd.f32 %v318_v53, %v317_v51  ;;  %v313_v0 = vrot.slane %v312_v56, 2 }
  0x39   : > { %v262_v58 = vadd.f32 %v261_v54, %v260_v48  ;;  %v268_v59 = vrot.slane %v267_v55, 2  ;;  %v356_v49 = vsub.s32 %v353_v45, %v612_v24  ;;  %v383_v54 = vsub.s32 1, %v612_v24 }
  0x3a   : > { %v320_v5 = vrot.slane %v319_v60, 2  ;;  %v314_v8 = vadd.f32 %v313_v0, %v312_v56 }
  0x3b   : > { %v263_v62 = vrot.slane %v262_v58, 1  ;;  %v269_v63 = vadd.f32 %v268_v59, %v267_v55 }
  0x3c   : > { %v321_v10 = vadd.f32 %v320_v5, %v319_v60  ;;  %v315_v12 = vrot.slane %v314_v8, 1 }
  0x3d   : > { %v264_v3 = vadd.f32 %v263_v62, %v262_v58  ;;  %v270_v4 = vrot.slane %v269_v63, 1 }
  0x3e   : > { %v322_v14 = vrot.slane %v321_v10, 1  ;;  %v316_v16 = vadd.f32 %v315_v12, %v314_v8 }
  0x3f   : > { %v271_v7 = vadd.f32 %v270_v4, %v269_v63  ;;  %522 = vlog2.f32 %v264_v3 }
  0x40   : > { %524 = vrcp.f32 %v264_v3  ;;  %v323_v19 = vadd.f32 %v322_v14, %v321_v10 }
  0x41   : > { %526 = vlog2.f32 %v271_v7 }
  0x42   : > { %528 = vrcp.f32 %v271_v7 }
  0x49   : > { %v523_v18 = vpop.eup %522 }
  0x4a   : > { %v525_v20 = vpop.eup %524  ;;  %v325_v26 = vmul.f32 0.6931472, %v523_v18 }
  0x4b   : > { %v527_v27 = vpop.eup %526  ;;  %v336_v29 = vmul.f32 %v525_v20, %v316_v16 }
  0x4c   : > { %v529_v30 = vpop.eup %528  ;;  %v327_v32 = vmul.f32 0.6931472, %v527_v27  ;;  %v328_v33 = vadd.f32 %v325_v26, %v608_v21 }
  0x4d   : > { %v337_v34 = vmul.f32 %v529_v30, %v323_v19  ;;  %v338_v35 = vsub.f32 1.0, %v336_v29 }
  0x4e   : > { %v329_v38 = vadd.f32 %v327_v32, %v610_v23  ;;  %v330_v39 = vsub.f32 %v328_v33, %v300_v22 }
  0x4f   : > { %v339_v40 = vsub.f32 1.0, %v337_v34  ;;  %v340_v41 = vmul.f32 %v338_v35, %v338_v35 }
  0x50   : > { %v331_v42 = vsub.f32 %v329_v38, %v307_v31  ;;  %v332_v43 = vmax.f32 %v330_v39, 0.0 }
  0x51   : > { %v341_v44 = vmul.f32 %v339_v40, %v339_v40 }
  0x52   : > { %v333_v46 = vmax.f32 %v331_v42, 0.0  ;;  %v342_v47 = vmul.f32 %v340_v41, %v332_v43 }
  0x54   : > { %v343_v48 = vmul.f32 %v341_v44, %v333_v46 }
  0x56   : > { %v346_v50 = vcombine.low %v342_v47, %v343_v48 }
  0x58   : > { %v348_v21 = vsel %vm614_vm4, %v346_v50, 0.0 }
  0x59   : > { %v357_v51 = vrot.slane %v348_v21, %v356_v49 }
  0x5b   : > { %v364_v53 = vrot.slane %v357_v51, %v356_v49 }
  0x5d   : > { %v366_v23 = vadd.f32 %v364_v53, %v349_v52 }
  0x5f   : > { %371 = vst.msk [vmem:[#allocation2] sm:$0x3] %vm592_vm0, %v366_v23 }
  0x66   : > { %v375_v55 = vld [vmem:[#allocation2] sm:$0x3] }
  0x67   : > { %v380_v56 = vrot.slane %v375_v55, %v621_v28  ;;  %v384_v57 = vrot.slane %v375_v55, %v383_v54 }
  0x69   : > { %v388_v58 = vsel %vm387_vm7, %v380_v56, 0.0  ;;  %v389_v59 = vsel %vm387_vm7, %v384_v57, 0.0 }
  0x6a   : > { %v390_v60 = vadd.f32 %v389_v59, %v388_v58 }
  0x6c   : > { %391 = vadd.xlane.f32.xlu0 %v390_v60 }
  0xf9   : > { %v392_v25 = vpop.xlane.xlu0 %391 }
  0xfa   : > { %v393_v61 = vrot.slane %v392_v25, 4 }
  0xfc   : > { %v394_v62 = vadd.f32 %v393_v61, %v392_v25 }
  0xfe   : > { %v395_v63 = vrot.slane %v394_v62, 2 }
 0x100   : > { %v396_v0 = vadd.f32 %v395_v63, %v394_v62 }
 0x102   : > { %v397_v2 = vrot.slane %v396_v0, 1 }
 0x104   : > { %v398_v1 = vadd.f32 %v397_v2, %v396_v0 }
 0x106   : > { %490 = vpush %v398_v1 }
 0x137   : > { %s491_s24 = spop %490 }
 0x138   : > { %v400_v24 = vstv %s491_s24 }
 0x139   : > { %402 = vst.msk [vmem:[%s200_s23] sm:$0x1] %vm401_vm8, %v400_v24 }
 0x13a PF: > { %s12_s11 = sadd.s32 1, %s552_s11   ;;  %s666_s9 = smov %s548_s10 }
 0x13b   : > { %p9_p5 = scmp.ge.s32.totalorder %s12_s11, 4   ;;  %s667_s10 = smov %s669_s12 }
 0x13d   :  { %11 = sbr.rel (!%p9_p5) target bundleno = 2 (0x2), region = 69 }

</bundles_post_ra>
